<compile_context>
chip_gen: v5e
topology: v5e:2x2
jax: 0.10.0
libtpu: 0.0.40
codegen_flags: <defaults>
</compile_context>

<pallas_src>
import jax
import jax.numpy as jnp
from jax.experimental import pallas as pl
from jax.experimental.pallas import tpu as pltpu

LANE = 128
SUBLANE = 8


def _round_up(x, m):
    return ((x + m - 1) // m) * m


def _fused_head_kernel(pooled_ref, proj_ref, w_ref, b_ref, out_ref):
    # pooled_ref: [TB, C_in]  (bf16)   — one batch tile of pooled features
    # proj_ref:   [C_in, E]   (bf16)   — frozen backbone projection (resident)
    # w_ref:      [E, C_pad]  (bf16)   — head weight, lane-padded (resident)
    # b_ref:      [1, C_pad]  (f32)    — head bias, lane-padded (resident)
    # out_ref:    [TB, C_pad] (f32)
    # Frozen backbone projection: bf16 MXU matmul, f32 accumulation.
    emb = jnp.dot(pooled_ref[...], proj_ref[...],
                  preferred_element_type=jnp.float32)
    # Head matmul: feed bf16 back into the MXU, accumulate in f32.
    logits = jnp.dot(emb.astype(w_ref.dtype), w_ref[...],
                     preferred_element_type=jnp.float32)
    # f32 epilogue (bias + sigmoid): mandatory on v5e (no bf16 VPU/EUP), fine elsewhere.
    logits = logits + b_ref[...]
    out_ref[...] = jax.nn.sigmoid(logits).astype(out_ref.dtype)


def wall_classifier_head_fused(pooled, proj, w_head, b_head, *, block_b=256,
                               compute_dtype=jnp.bfloat16):
    """sigmoid((pooled @ proj) @ w_head + b_head) in one Pallas kernel.

    pooled: [B, C_in] f32, proj: [C_in, E] f32 (frozen), w_head: [E, C] f32
    (PyTorch weight transposed), b_head: [C] f32.  Returns [B, C] f32.
    """
    B, C_in = pooled.shape
    E = proj.shape[1]
    C = w_head.shape[1]

    # Lane-pad the class dimension so output stores are full-lane vst and the MXU
    # N dimension is dense.  Padded weight columns and bias entries are zero.
    C_pad = _round_up(C, LANE)
    # Batch tile: multiple of 8 sublanes; small batches collapse to one tile.
    TB = min(block_b, _round_up(B, SUBLANE))
    B_pad = _round_up(B, TB)

    pooled_p = jnp.zeros((B_pad, C_in), compute_dtype).at[:B].set(
        pooled.astype(compute_dtype))
    proj_c = proj.astype(compute_dtype)
    w_p = jnp.zeros((E, C_pad), compute_dtype).at[:, :C].set(
        w_head.astype(compute_dtype))
    b_p = jnp.zeros((1, C_pad), jnp.float32).at[0, :C].set(
        b_head.astype(jnp.float32))

    grid = (B_pad // TB,)
    out_p = pl.pallas_call(
        _fused_head_kernel,
        out_shape=jax.ShapeDtypeStruct((B_pad, C_pad), jnp.float32),
        grid_spec=pltpu.PrefetchScalarGridSpec(
            num_scalar_prefetch=0,
            grid=grid,
            in_specs=[
                pl.BlockSpec((TB, C_in), lambda i: (i, 0)),   # pooled: blocked on B
                pl.BlockSpec((C_in, E), lambda i: (0, 0)),    # proj:   resident
                pl.BlockSpec((E, C_pad), lambda i: (0, 0)),   # w:      resident
                pl.BlockSpec((1, C_pad), lambda i: (0, 0)),   # b:      resident
            ],
            out_specs=pl.BlockSpec((TB, C_pad), lambda i: (i, 0)),
        ),
        compiler_params=pltpu.CompilerParams(
            dimension_semantics=("parallel",),   # shard batch tiles across TCs (v7x)
        ),
    )(pooled_p, proj_c, w_p, b_p)

    # Drop batch padding and lane padding (padded lanes contain sigmoid(0)=0.5 junk).
    return out_p[:B, :C]


def frozen_backbone_stub_pool(x):
    """Spatial pooling part of the frozen-backbone stand-in (torch.no_grad path).

    The projection to embedding_size is fused into the Pallas kernel; only the
    cheap global-average-pool stays in plain JAX.
    """
    # TODO(synk): the real DINO ViT backbone is an external injected module; this is a
    # deterministic frozen stand-in producing embeddings of the correct shape.
    pooled = jnp.mean(x, axis=(2, 3))            # [B, C_in]
    return jax.lax.stop_gradient(pooled)         # mimic torch.no_grad()


def wall_classifier_forward(x, proj, w_head, b_head):
    pooled = frozen_backbone_stub_pool(x)
    return wall_classifier_head_fused(pooled, proj, w_head, b_head)


if __name__ == "__main__":
    key = jax.random.PRNGKey(0)
    k_x, k_proj, k_w, k_b = jax.random.split(key, 4)

    # Small shapes consistent with the forward pass.
    batch, in_ch, spatial = 2, 4, 16
    embedding_size = 32          # self.backbones[backbone_name]['embedding_size']
    num_classes = 8

    x = jax.random.normal(k_x, (batch, in_ch, spatial, spatial), dtype=jnp.float32)

    # Frozen backbone stub projection (deterministic).
    proj = jax.random.normal(k_proj, (in_ch, embedding_size), dtype=jnp.float32) * 0.1

    # Head parameters (nn.Linear(embedding_size, num_classes)).
    # PyTorch stores weight as [num_classes, embedding_size]; we keep the transpose.
    w_head = jax.random.normal(k_w, (embedding_size, num_classes), dtype=jnp.float32) * 0.05
    b_head = jax.random.normal(k_b, (num_classes,), dtype=jnp.float32) * 0.01

    out = wall_classifier_forward(x, proj, w_head, b_head)
    out = jax.block_until_ready(out)
    assert out.shape == (batch, num_classes)

    # Reference 1: bf16-matched reference (same MXU input precision) — tight tolerance.
    pooled_ref = jnp.mean(x, axis=(2, 3))
    emb_bf = jnp.dot(pooled_ref.astype(jnp.bfloat16), proj.astype(jnp.bfloat16),
                     preferred_element_type=jnp.float32)
    logits_bf = jnp.dot(emb_bf.astype(jnp.bfloat16), w_head.astype(jnp.bfloat16),
                        preferred_element_type=jnp.float32) + b_head
    ref_bf16 = jax.nn.sigmoid(logits_bf)
    assert jnp.allclose(out, ref_bf16, atol=1e-4, rtol=1e-4), "mismatch vs bf16 reference"

    # Reference 2: full-f32 PyTorch-semantics reference — relaxed (bf16 MXU inputs).
    ref_f32 = jax.nn.sigmoid((pooled_ref @ proj) @ w_head + b_head)
    assert jnp.allclose(out, ref_f32, atol=2e-2, rtol=2e-2), "mismatch vs f32 reference"

    print("KERNEL_OK")
</pallas_src>

<mosaic_0001>
module attributes {stable_mosaic.version = 11 : i64} {
  func.func @_fused_head_kernel(%arg0: i32, %arg1: memref<8x4xbf16, #tpu.memory_space<vmem>>, %arg2: memref<4x32xbf16, #tpu.memory_space<vmem>>, %arg3: memref<32x128xbf16, #tpu.memory_space<vmem>>, %arg4: memref<1x128xf32, #tpu.memory_space<vmem>>, %arg5: memref<8x128xf32, #tpu.memory_space<vmem>>) attributes {dimension_semantics = [#tpu.dimension_semantics<parallel>], iteration_bounds = array<i64: 1>, scalar_prefetch = 0 : i64, scratch_operands = 0 : i64, tpu.core_type = #tpu.core_type<tc>, window_params = [{transform_indices = @transform_0, window_bounds = array<i64: 8, 4>}, {pipeline_mode = #tpu.pipeline_mode<synchronous>, transform_indices = @transform_1, window_bounds = array<i64: 4, 32>}, {pipeline_mode = #tpu.pipeline_mode<synchronous>, transform_indices = @transform_2, window_bounds = array<i64: 32, 128>}, {pipeline_mode = #tpu.pipeline_mode<synchronous>, transform_indices = @transform_3, window_bounds = array<i64: 1, 128>}, {transform_indices = @transform_4, window_bounds = array<i64: 8, 128>}]} {
    %c0 = arith.constant 0 : index
    %c0_0 = arith.constant 0 : index
    %0 = vector.load %arg1[%c0, %c0_0] : memref<8x4xbf16, #tpu.memory_space<vmem>>, vector<8x4xbf16>
    %c0_1 = arith.constant 0 : index
    %c0_2 = arith.constant 0 : index
    %1 = vector.load %arg2[%c0_1, %c0_2] : memref<4x32xbf16, #tpu.memory_space<vmem>>, vector<4x32xbf16>
    %cst = arith.constant dense<0.000000e+00> : vector<8x32xf32>
    %2 = tpu.matmul %0, %1, %cst {dimension_numbers = #tpu.dot_dimension_numbers<[1], [0], [0], [1], [0, 0, 1, 1], [], []>} : vector<8x4xbf16>, vector<4x32xbf16>, vector<8x32xf32> -> vector<8x32xf32>
    %3 = arith.truncf %2 : vector<8x32xf32> to vector<8x32xbf16>
    %c0_3 = arith.constant 0 : index
    %c0_4 = arith.constant 0 : index
    %4 = vector.load %arg3[%c0_3, %c0_4] : memref<32x128xbf16, #tpu.memory_space<vmem>>, vector<32x128xbf16>
    %cst_5 = arith.constant dense<0.000000e+00> : vector<8x128xf32>
    %5 = tpu.matmul %3, %4, %cst_5 {dimension_numbers = #tpu.dot_dimension_numbers<[1], [0], [0], [1], [0, 0, 1, 1], [], []>} : vector<8x32xbf16>, vector<32x128xbf16>, vector<8x128xf32> -> vector<8x128xf32>
    %c0_6 = arith.constant 0 : index
    %c0_7 = arith.constant 0 : index
    %6 = vector.load %arg4[%c0_6, %c0_7] : memref<1x128xf32, #tpu.memory_space<vmem>>, vector<1x128xf32>
    %7 = vector.broadcast %6 : vector<1x128xf32> to vector<8x128xf32>
    %8 = arith.addf %5, %7 : vector<8x128xf32>
    %9 = arith.negf %8 : vector<8x128xf32>
    %10 = math.exp %9 : vector<8x128xf32>
    %cst_8 = arith.constant 1.000000e+00 : f32
    %11 = vector.broadcast %cst_8 : f32 to vector<8x128xf32>
    %12 = arith.addf %11, %10 : vector<8x128xf32>
    %13 = arith.divf %11, %12 : vector<8x128xf32>
    %c0_9 = arith.constant 0 : index
    %c0_10 = arith.constant 0 : index
    %14 = vector.load %arg5[%c0_9, %c0_10] : memref<8x128xf32, #tpu.memory_space<vmem>>, vector<8x128xf32>
    tpu.vector_store %arg5[%c0_9, %c0_10], %13 {strides = array<i32>} : memref<8x128xf32, #tpu.memory_space<vmem>>, vector<8x128xf32>,
    return
  }
  func.func @transform_0(%arg0: i32) -> (i32, i32) {
    %c0_i32 = arith.constant 0 : i32
    %c0_i32_0 = arith.constant 0 : i32
    return %arg0, %c0_i32 : i32, i32
  }
  func.func @transform_1(%arg0: i32) -> (i32, i32) {
    %c0_i32 = arith.constant 0 : i32
    %c0_i32_0 = arith.constant 0 : i32
    %c0_i32_1 = arith.constant 0 : i32
    return %c0_i32, %c0_i32_0 : i32, i32
  }
  func.func @transform_2(%arg0: i32) -> (i32, i32) {
    %c0_i32 = arith.constant 0 : i32
    %c0_i32_0 = arith.constant 0 : i32
    %c0_i32_1 = arith.constant 0 : i32
    return %c0_i32, %c0_i32_0 : i32, i32
  }
  func.func @transform_3(%arg0: i32) -> (i32, i32) {
    %c0_i32 = arith.constant 0 : i32
    %c0_i32_0 = arith.constant 0 : i32
    %c0_i32_1 = arith.constant 0 : i32
    return %c0_i32, %c0_i32_0 : i32, i32
  }
  func.func @transform_4(%arg0: i32) -> (i32, i32) {
    %c0_i32 = arith.constant 0 : i32
    %c0_i32_0 = arith.constant 0 : i32
    return %arg0, %c0_i32 : i32, i32
  }
}

</mosaic_0001>

<bundles_post_ra>
// kernel: tpu_custom_call.1
= control target key start
LH: loop header
LB: loop body
LE: loop exit
PB: predicated region body
PF: predicated region fallthrough
CT: control target
= control target key end

     0   :  { %9 = vsyncpa [#allocation3], 0  ;;  %s251_s0 = inlined_call_operand.vmem [shape: bf16[8,4], index: 0, kind: input, shape index: {}]   ;;  %s252_s1 = inlined_call_operand.vmem [shape: bf16[4,32], index: 1, kind: input, shape index: {}]   ;;  %s253_s2 = inlined_call_operand.hbm [shape: bf16[32,128], index: 2, kind: input, shape index: {}]   ;;  %s254_s3 = inlined_call_operand.vmem [shape: f32[1,128], index: 3, kind: input, shape index: {}]   ;;  %s255_s4 = inlined_call_operand.hbm [shape: f32[8,128], index: 4, kind: output, shape index: {}]  }
   0x1   :  { %10 = vsyncpa [#allocation4], 0  ;;  %s19_s17 = sshll.u32 %s253_s2, 4  ;;  %s207_s18 = smov [#allocation2]   ;;  %s20_s17 = int_to_ptr.hbm [resolvable:$true] %s19_s17 }
   0x2   :  { %s21_s19 = sshll.u32 %s207_s18, 4  ;;  %s208_s20 = smov 64   ;;  %s22_s19 = int_to_ptr.vmem [resolvable:$true] %s21_s19 }
   0x3   :  { %s209_s21 = smov 4  }
   0x4   :  { %27 = dma.hbm_to_vmem [thread:$0]  %s20_s17, 256, %s22_s19, [#allocation3], %s208_s20, %s208_s20, %s209_s21  }
   0x5   :  { %203 = dma.done.wait [#allocation3], 256  }
   0x6   :  { %204 = vsyncadd [#allocation3], 4294967040  ;;  %vm41_vm0 = vcmask 1041408   ;;  %v36_v0 = vld [vmem:[%s252_s1] sm:$0x3]  ;;  %v145_v1 = vld [vmem:[#allocation2 + $0x8] sm:$0xff] }
   0x7   :  { %v43_v2 = vsel %vm41_vm0, %v36_v0, 0  ;;  %v35_v3 = vld [vmem:[%s251_s0] sm:$0xf]  ;;  %vm37_vm1 = vcmask 31744   ;;  %89 = vmatpush.bf16.msra.mxu1 %v145_v1  ;;  %vm79_vm2 = vcmask 261120   ;;  %s210_s0 = smov [#allocation5]  }
   0x8   :  { %52 = vmatpush.bf16.msra.mxu0 %v43_v2  ;;  %v144_v4 = vld [vmem:[#allocation2] sm:$0xff]  ;;  %s121_s1 = sshll.u32 %s210_s0, 4  ;;  %s122_s1 = int_to_ptr.vmem [resolvable:$true] %s121_s1 }
   0x9   :  { %v150_v8 = vld [vmem:[%s254_s3] ss:$0 sm:$0xff]  ;;  %s123_s3 = sshll.u32 %s255_s4, 4  ;;  %s124_s3 = int_to_ptr.hbm [resolvable:$true] %s123_s3 }
   0xb   :  { %133 = vmatmul.msk.bf16.vlgmr.msra.gmra.mxu0 %vm37_vm1, %v35_v3  ;;  %90 = vmatpush.bf16.msra.mxu1 %v144_v4 }
  0x88   :  { %v54_v5 = vpop.f32.mrf.mxu0 }
  0x89   :  { %v58_v6 = vpack.c.bf16 %v54_v5, %v54_v5 }
  0x8b   :  { %142 = vmatmul.msk.bf16.vlgmr.msra.gmra.mxu1 %vm79_vm2, %v58_v6 }
  0x90   :  { %v56_v7 = vpop.f32.mrf.mxu0 }
 0x108   :  { %v92_v9 = vpop.f32.mrf.mxu1 }
 0x109   :  { %v93_v10 = vadd.f32 %v150_v8, %v92_v9 }
 0x10b   :  { %v143_v11 = vmul.f32 -1.442695, %v93_v10 }
 0x10d   :  { %151 = vpow2.f32 %v143_v11 }
 0x110   :  { %v94_v12 = vpop.f32.mrf.mxu1 }
 0x113   :  { %v152_v13 = vpop.eup %151 }
 0x114   :  { %v99_v14 = vadd.f32 1.0, %v152_v13 }
 0x116   :  { %153 = vrcp.f32 %v99_v14  ;;  %v111_v18 = vand.u32 2147483648, %v99_v14  ;;  %v109_v20 = vand.u32 2147483647, %v99_v14  ;;  %vm105_vm4 = vweird.f32 %v99_v14 }
 0x118   :  { %v112_v22 = vor.u32 1.1754944e-38, %v111_v18  ;;  %vm110_vm6 = vcmp.eq.f32.partialorder %v109_v20, 8.507059e+37 }
 0x11c   :  { %v154_v15 = vpop.eup %153 }
 0x11d   :  { %v101_v16 = vmul.f32 %v154_v15, %v99_v14  ;;  %vm106_vm3 = vweird.f32 %v154_v15 }
 0x11e   :  { %vm107_vm5 = vmor %vm105_vm4, %vm106_vm3 }
 0x11f   :  { %v102_v17 = vsub.f32 1.0, %v101_v16 }
 0x121   :  { %v103_v19 = vmul.f32 %v154_v15, %v102_v17 }
 0x123   :  { %v104_v21 = vadd.f32 %v154_v15, %v103_v19 }
 0x125   :  { %v108_v23 = vsel %vm107_vm5, %v154_v15, %v104_v21 }
 0x126   :  { %v113_v24 = vsel %vm110_vm6, %v112_v22, %v108_v23 }
 0x127   :  { %115 = vst [vmem:[#allocation5] sm:$0xff] %v113_v24 }
 0x128   :  { %126 = dma.vmem_to_hbm [thread:$0]  %s122_s1, 128, %s124_s3, [#allocation4]  }
 0x129   :  { %205 = dma.done.wait [#allocation4], 128  }
 0x12a   :  { %206 = vsyncadd [#allocation4], 4294967168 }
 0x12b   :  { %131 = vsyncpa [#allocation3], 1 }
 0x12c   :  { %132 = vsyncpa [#allocation4], 1 }

</bundles_post_ra>
